<compile_context>
chip_gen: v7x
topology: tpu7x:2x2x1
jax: 0.10.0
libtpu: 0.0.40
codegen_flags: <defaults>
</compile_context>

<pallas_src>
import functools

import jax
import jax.numpy as jnp
from jax.experimental import pallas as pl
from jax.experimental.pallas import tpu as pltpu


def _residual_block_kernel(x_ref, ws_ref, a_ref, b1_ref, bb_ref, b2_ref,
                           out_ref, *, img_rows):
    """Processes a block of T stacked images; everything lane-dense.

    x_ref   : (T*H, W*Cin)        input rows, channels-last, width in lanes
    ws_ref  : (W*Cin, W*C2p)      1x1 shortcut weights, block-diagonal over width
    a_ref   : (3, W*Cin, W*C1)    conv1 banded block-Toeplitz weights (one per kh)
    b1_ref  : (1, W*C1)           conv1 bias tiled along lanes
    bb_ref  : (3, W*C1, W*C2p)    conv2 banded weights (output channels padded)
    b2_ref  : (1, W*C2p)          conv2 bias tiled along lanes (padded)
    out_ref : (T*H, W*C2p)        output rows (padded channels stay zero)
    """
    f32 = jnp.float32
    x = x_ref[...]
    rows = x.shape[0]

    # Image-boundary masks: the row above / below is zero (SAME padding) at the
    # top / bottom row of each of the T stacked images.
    row_in_img = jax.lax.broadcasted_iota(jnp.int32, (rows, 1), 0) % img_rows
    top_row = row_in_img == 0
    bot_row = row_in_img == img_rows - 1

    def shift_up(y):    # y[h-1], zero at image top (XLU roll + VPU select)
        return jnp.where(top_row, 0.0, pltpu.roll(y, shift=1, axis=0))

    def shift_dn(y):    # y[h+1], zero at image bottom
        return jnp.where(bot_row, 0.0, pltpu.roll(y, shift=rows - 1, axis=0))

    # ---- conv1: three banded taps, sequential accumulation ---------------------
    acc1 = jnp.dot(shift_up(x), a_ref[0], preferred_element_type=f32)
    acc1 += jnp.dot(x,          a_ref[1], preferred_element_type=f32)
    acc1 += jnp.dot(shift_dn(x), a_ref[2], preferred_element_type=f32)

    # Dropout2d(p=0.0) and batchnorm=False are identities in this configuration.
    h1 = jnp.maximum(acc1 + b1_ref[...], 0.0)                       # (rows, W*C1)

    # ---- 1x1 shortcut (separate matmul, output already padded to 128 lanes) ----
    shortcut = jnp.dot(x, ws_ref[...], preferred_element_type=f32)  # (rows, W*C2p)

    # ---- conv2 ------------------------------------------------------------------
    acc2 = jnp.dot(shift_up(h1), bb_ref[0], preferred_element_type=f32)
    acc2 += jnp.dot(h1,          bb_ref[1], preferred_element_type=f32)
    acc2 += jnp.dot(shift_dn(h1), bb_ref[2], preferred_element_type=f32)
    main = acc2 + b2_ref[...]

    # ---- residual add + final ReLU (full 128-lane unmasked store) ---------------
    out_ref[...] = jnp.maximum(main + shortcut, 0.0).astype(out_ref.dtype)


def _width_band(w_k, W, pad, c_out_pad=None):
    """Banded block-Toeplitz matrix for the horizontal part of one vertical tap.

    w_k: (Cout, Cin, K) conv weights at a fixed kh  ->  (W*Cin, W*Cp) with entry
    [w_in*Cin+ci, w_out*Cp+co] = w_k[co, ci, kw] where kw = w_in - w_out + pad.
    Zero SAME-padding in width is implicit (out-of-range taps have no entry);
    output channels may be zero-padded to Cp for lane-dense (128-wide) stores.
    """
    Cout, Cin, K = w_k.shape
    Cp = Cout if c_out_pad is None else c_out_pad
    out = jnp.zeros((W * Cin, W * Cp), jnp.float32)
    for kw in range(K):
        blk = jnp.transpose(w_k[:, :, kw]).astype(jnp.float32)      # (Cin, Cout)
        if Cp != Cout:
            blk = jnp.pad(blk, ((0, 0), (0, Cp - Cout)))
        out = out + jnp.kron(jnp.eye(W, k=pad - kw, dtype=jnp.float32), blk)
    return out


def prepare_residual_block_params(w1, b1, w2, b2, ws, W):
    """One-time conversion of PyTorch OIHW weights to banded lane-dense matrices."""
    C1, Cin, K1, _ = w1.shape
    C2, _, K2, _ = w2.shape
    assert K1 == 3 and K2 == 3, "row-shift structure is hard-coded for k=3"
    P1, P2 = (K1 - 1) // 2, (K2 - 1) // 2

    # Pad conv2 / shortcut output channels so the output block is a multiple of
    # 128 lanes (unmasked full-width stores); padding is sliced off afterwards.
    lane_quant = max(1, 128 // W)
    C2p = -(-C2 // lane_quant) * lane_quant

    a_stack = jnp.stack([_width_band(w1[:, :, kh, :], W, P1)
                         for kh in range(K1)])                      # (3, W*Cin, W*C1)
    b_stack = jnp.stack([_width_band(w2[:, :, kh, :], W, P2, c_out_pad=C2p)
                         for kh in range(K2)])                      # (3, W*C1, W*C2p)

    ws_blk = jnp.pad(jnp.transpose(ws[:, :, 0, 0]).astype(jnp.float32),
                     ((0, 0), (0, C2p - C2)))
    ws_band = jnp.kron(jnp.eye(W, dtype=jnp.float32), ws_blk)       # (W*Cin, W*C2p)

    b1_row = jnp.tile(b1.astype(jnp.float32), W).reshape(1, W * C1)
    b2_row = jnp.tile(jnp.pad(b2.astype(jnp.float32), (0, C2p - C2)),
                      W).reshape(1, W * C2p)
    return a_stack, ws_band, b1_row, b_stack, b2_row


def _pick_images_per_block(N, H, target_rows=256):
    """Largest divisor T of N with T*H <= target_rows; keep >= 2 grid steps when
    there is enough work so v7x megacore can shard the grid across both TCs."""
    t_max = max(1, target_rows // H)
    best = 1
    for t in range(1, N + 1):
        if N % t != 0 or t > t_max:
            continue
        if N >= 4 and N // t < 2:
            continue
        best = t
    return best


@functools.partial(jax.jit, static_argnames=("c_out",))
def residual_block_forward(x_nchw, a_stack, ws_band, b1_row, b_stack, b2_row,
                           *, c_out):
    """x_nchw: (N, Cin, H, W) float32.  Returns (N, c_out, H, W)."""
    N, Cin, H, W = x_nchw.shape
    C1 = b1_row.shape[1] // W
    C2p = b2_row.shape[1] // W
    T = _pick_images_per_block(N, H)
    rows = T * H

    # NCHW -> lane-dense rows (N*H, W*Cin): channels last, width folded into lanes.
    x_rows = jnp.transpose(x_nchw, (0, 2, 3, 1)).reshape(N * H, W * Cin)
    x_rows = x_rows.astype(jnp.float32)

    kernel = functools.partial(_residual_block_kernel, img_rows=H)
    out_rows = pl.pallas_call(
        kernel,
        out_shape=jax.ShapeDtypeStruct((N * H, W * C2p), jnp.float32),
        grid=(N // T,),
        in_specs=[
            pl.BlockSpec((rows, W * Cin), lambda n: (n, 0)),
            pl.BlockSpec((W * Cin, W * C2p), lambda n: (0, 0)),
            pl.BlockSpec((3, W * Cin, W * C1), lambda n: (0, 0, 0)),
            pl.BlockSpec((1, W * C1), lambda n: (0, 0)),
            pl.BlockSpec((3, W * C1, W * C2p), lambda n: (0, 0, 0)),
            pl.BlockSpec((1, W * C2p), lambda n: (0, 0)),
        ],
        out_specs=pl.BlockSpec((rows, W * C2p), lambda n: (n, 0)),
        compiler_params=pltpu.CompilerParams(
            dimension_semantics=("parallel",)),
    )(x_rows, ws_band, a_stack, b1_row, b_stack, b2_row)

    out = out_rows.reshape(N, H, W, C2p)[..., :c_out]
    return jnp.transpose(out, (0, 3, 1, 2))                         # back to NCHW


if __name__ == "__main__":
    key = jax.random.PRNGKey(0)
    k_x, k_w1, k_b1, k_w2, k_b2, k_ws = jax.random.split(key, 6)

    # ResidualBlock(in_channels=4, channels=[8, 6], kernel_sizes=[3, 3])
    N, Cin, H, W = 2, 4, 16, 16
    C1, C2 = 8, 6
    K1, K2 = 3, 3

    x = jax.random.normal(k_x, (N, Cin, H, W), jnp.float32)
    w1 = jax.random.normal(k_w1, (C1, Cin, K1, K1), jnp.float32) * 0.1
    b1 = jax.random.normal(k_b1, (C1,), jnp.float32) * 0.1
    w2 = jax.random.normal(k_w2, (C2, C1, K2, K2), jnp.float32) * 0.1
    b2 = jax.random.normal(k_b2, (C2,), jnp.float32) * 0.1
    ws = jax.random.normal(k_ws, (C2, Cin, 1, 1), jnp.float32) * 0.1

    # One-time weight preparation (hoisted out of the per-forward jit path).
    params = prepare_residual_block_params(w1, b1, w2, b2, ws, W)

    out = jax.block_until_ready(residual_block_forward(x, *params, c_out=C2))

    # Pure-JAX reference mirroring the PyTorch forward (NCHW, SAME padding).
    dn = ('NCHW', 'OIHW', 'NCHW')
    h = jax.lax.conv_general_dilated(x, w1, (1, 1), 'SAME', dimension_numbers=dn)
    h = jnp.maximum(h + b1[None, :, None, None], 0.0)
    m = jax.lax.conv_general_dilated(h, w2, (1, 1), 'SAME', dimension_numbers=dn)
    m = m + b2[None, :, None, None]
    s = jax.lax.conv_general_dilated(x, ws, (1, 1), 'SAME', dimension_numbers=dn)
    ref = jnp.maximum(m + s, 0.0)

    assert out.shape == (N, C2, H, W)
    assert jnp.allclose(out, ref, atol=1e-4, rtol=1e-4), \
        float(jnp.abs(out - ref).max())
    print("KERNEL_OK")
</pallas_src>

<mosaic_0001>
module attributes {stable_mosaic.version = 11 : i64} {
  func.func @_residual_block_kernel(%arg0: i32, %arg1: memref<32x64xf32, #tpu.memory_space<vmem>>, %arg2: memref<64x128xf32, #tpu.memory_space<vmem>>, %arg3: memref<3x64x128xf32, #tpu.memory_space<vmem>>, %arg4: memref<1x128xf32, #tpu.memory_space<vmem>>, %arg5: memref<3x128x128xf32, #tpu.memory_space<vmem>>, %arg6: memref<1x128xf32, #tpu.memory_space<vmem>>, %arg7: memref<32x128xf32, #tpu.memory_space<vmem>>) attributes {dimension_semantics = [#tpu.dimension_semantics<parallel>], iteration_bounds = array<i64: 1>, scalar_prefetch = 0 : i64, scratch_operands = 0 : i64, tpu.core_type = #tpu.core_type<tc>, window_params = [{transform_indices = @transform_0, window_bounds = array<i64: 32, 64>}, {pipeline_mode = #tpu.pipeline_mode<synchronous>, transform_indices = @transform_1, window_bounds = array<i64: 64, 128>}, {pipeline_mode = #tpu.pipeline_mode<synchronous>, transform_indices = @transform_2, window_bounds = array<i64: 3, 64, 128>}, {pipeline_mode = #tpu.pipeline_mode<synchronous>, transform_indices = @transform_3, window_bounds = array<i64: 1, 128>}, {pipeline_mode = #tpu.pipeline_mode<synchronous>, transform_indices = @transform_4, window_bounds = array<i64: 3, 128, 128>}, {pipeline_mode = #tpu.pipeline_mode<synchronous>, transform_indices = @transform_5, window_bounds = array<i64: 1, 128>}, {transform_indices = @transform_6, window_bounds = array<i64: 32, 128>}]} {
    %c0 = arith.constant 0 : index
    %c0_0 = arith.constant 0 : index
    %0 = vector.load %arg1[%c0, %c0_0] : memref<32x64xf32, #tpu.memory_space<vmem>>, vector<32x64xf32>
    %1 = tpu.iota {dimensions = array<i32: 0>} : vector<32x1xi32>
    %c16_i32 = arith.constant 16 : i32
    %c0_i32 = arith.constant 0 : i32
    %2 = arith.cmpi eq, %c16_i32, %c0_i32 : i32
    %c1_i32 = arith.constant 1 : i32
    %3 = arith.select %2, %c1_i32, %c16_i32 : i32
    %4 = vector.broadcast %3 : i32 to vector<32x1xi32>
    %5 = arith.remsi %1, %4 : vector<32x1xi32>
    %c0_i32_1 = arith.constant 0 : i32
    %6 = vector.broadcast %c0_i32_1 : i32 to vector<32x1xi32>
    %7 = arith.cmpi ne, %5, %6 : vector<32x1xi32>
    %c0_i32_2 = arith.constant 0 : i32
    %8 = vector.broadcast %c0_i32_2 : i32 to vector<32x1xi32>
    %9 = arith.cmpi slt, %5, %8 : vector<32x1xi32>
    %c0_i32_3 = arith.constant 0 : i32
    %10 = arith.cmpi slt, %3, %c0_i32_3 : i32
    %11 = vector.broadcast %10 : i1 to vector<32x1xi1>
    %12 = vector.broadcast %11 : vector<32x1xi1> to vector<32x1xi1>
    %13 = arith.xori %9, %12 : vector<32x1xi1>
    %14 = arith.andi %13, %7 : vector<32x1xi1>
    %15 = vector.broadcast %3 : i32 to vector<32x1xi32>
    %16 = arith.addi %5, %15 : vector<32x1xi32>
    %17 = arith.select %14, %16, %5 : vector<32x1xi1>, vector<32x1xi32>
    %c0_i32_4 = arith.constant 0 : i32
    %18 = vector.broadcast %c0_i32_4 : i32 to vector<32x1xi32>
    %19 = arith.cmpi eq, %17, %18 : vector<32x1xi32>
    %c15_i32 = arith.constant 15 : i32
    %20 = vector.broadcast %c15_i32 : i32 to vector<32x1xi32>
    %21 = arith.cmpi eq, %17, %20 : vector<32x1xi32>
    %c1_i32_5 = arith.constant 1 : i32
    %22 = tpu.dynamic_rotate %0 by %c1_i32_5 dim 0 : vector<32x64xf32>, i32 -> vector<32x64xf32>
    %cst = arith.constant 0.000000e+00 : f32
    %23 = vector.shape_cast %19 : vector<32x1xi1> to vector<32x1xi1>
    %24 = vector.broadcast %23 : vector<32x1xi1> to vector<32x64xi1>
    %25 = vector.broadcast %cst : f32 to vector<32x64xf32>
    %26 = arith.select %24, %25, %22 : vector<32x64xi1>, vector<32x64xf32>
    %c0_6 = arith.constant 0 : index
    %c0_7 = arith.constant 0 : index
    %c0_8 = arith.constant 0 : index
    %27 = vector.load %arg3[%c0_6, %c0_7, %c0_8] : memref<3x64x128xf32, #tpu.memory_space<vmem>>, vector<1x64x128xf32>
    %28 = vector.shape_cast %27 : vector<1x64x128xf32> to vector<64x128xf32>
    %cst_9 = arith.constant dense<0.000000e+00> : vector<32x128xf32>
    %29 = tpu.matmul %26, %28, %cst_9 {dimension_numbers = #tpu.dot_dimension_numbers<[1], [0], [0], [1], [0, 0, 1, 1], [], []>} : vector<32x64xf32>, vector<64x128xf32>, vector<32x128xf32> -> vector<32x128xf32>
    %c1 = arith.constant 1 : index
    %c0_10 = arith.constant 0 : index
    %c0_11 = arith.constant 0 : index
    %30 = vector.load %arg3[%c1, %c0_10, %c0_11] : memref<3x64x128xf32, #tpu.memory_space<vmem>>, vector<1x64x128xf32>
    %31 = vector.shape_cast %30 : vector<1x64x128xf32> to vector<64x128xf32>
    %cst_12 = arith.constant dense<0.000000e+00> : vector<32x128xf32>
    %32 = tpu.matmul %0, %31, %cst_12 {dimension_numbers = #tpu.dot_dimension_numbers<[1], [0], [0], [1], [0, 0, 1, 1], [], []>} : vector<32x64xf32>, vector<64x128xf32>, vector<32x128xf32> -> vector<32x128xf32>
    %33 = arith.addf %29, %32 : vector<32x128xf32>
    %c31_i32 = arith.constant 31 : i32
    %34 = tpu.dynamic_rotate %0 by %c31_i32 dim 0 : vector<32x64xf32>, i32 -> vector<32x64xf32>
    %cst_13 = arith.constant 0.000000e+00 : f32
    %35 = vector.shape_cast %21 : vector<32x1xi1> to vector<32x1xi1>
    %36 = vector.broadcast %35 : vector<32x1xi1> to vector<32x64xi1>
    %37 = vector.broadcast %cst_13 : f32 to vector<32x64xf32>
    %38 = arith.select %36, %37, %34 : vector<32x64xi1>, vector<32x64xf32>
    %c2 = arith.constant 2 : index
    %c0_14 = arith.constant 0 : index
    %c0_15 = arith.constant 0 : index
    %39 = vector.load %arg3[%c2, %c0_14, %c0_15] : memref<3x64x128xf32, #tpu.memory_space<vmem>>, vector<1x64x128xf32>
    %40 = vector.shape_cast %39 : vector<1x64x128xf32> to vector<64x128xf32>
    %cst_16 = arith.constant dense<0.000000e+00> : vector<32x128xf32>
    %41 = tpu.matmul %38, %40, %cst_16 {dimension_numbers = #tpu.dot_dimension_numbers<[1], [0], [0], [1], [0, 0, 1, 1], [], []>} : vector<32x64xf32>, vector<64x128xf32>, vector<32x128xf32> -> vector<32x128xf32>
    %42 = arith.addf %33, %41 : vector<32x128xf32>
    %c0_17 = arith.constant 0 : index
    %c0_18 = arith.constant 0 : index
    %43 = vector.load %arg4[%c0_17, %c0_18] : memref<1x128xf32, #tpu.memory_space<vmem>>, vector<1x128xf32>
    %44 = vector.broadcast %43 : vector<1x128xf32> to vector<32x128xf32>
    %45 = arith.addf %42, %44 : vector<32x128xf32>
    %cst_19 = arith.constant 0.000000e+00 : f32
    %46 = vector.broadcast %cst_19 : f32 to vector<32x128xf32>
    %47 = arith.maximumf %45, %46 : vector<32x128xf32>
    %c0_20 = arith.constant 0 : index
    %c0_21 = arith.constant 0 : index
    %48 = vector.load %arg2[%c0_20, %c0_21] : memref<64x128xf32, #tpu.memory_space<vmem>>, vector<64x128xf32>
    %cst_22 = arith.constant dense<0.000000e+00> : vector<32x128xf32>
    %49 = tpu.matmul %0, %48, %cst_22 {dimension_numbers = #tpu.dot_dimension_numbers<[1], [0], [0], [1], [0, 0, 1, 1], [], []>} : vector<32x64xf32>, vector<64x128xf32>, vector<32x128xf32> -> vector<32x128xf32>
    %c1_i32_23 = arith.constant 1 : i32
    %50 = tpu.dynamic_rotate %47 by %c1_i32_23 dim 0 : vector<32x128xf32>, i32 -> vector<32x128xf32>
    %cst_24 = arith.constant 0.000000e+00 : f32
    %51 = vector.shape_cast %19 : vector<32x1xi1> to vector<32x1xi1>
    %52 = vector.broadcast %51 : vector<32x1xi1> to vector<32x128xi1>
    %53 = vector.broadcast %cst_24 : f32 to vector<32x128xf32>
    %54 = arith.select %52, %53, %50 : vector<32x128xi1>, vector<32x128xf32>
    %c0_25 = arith.constant 0 : index
    %c0_26 = arith.constant 0 : index
    %c0_27 = arith.constant 0 : index
    %55 = vector.load %arg5[%c0_25, %c0_26, %c0_27] : memref<3x128x128xf32, #tpu.memory_space<vmem>>, vector<1x128x128xf32>
    %56 = vector.shape_cast %55 : vector<1x128x128xf32> to vector<128x128xf32>
    %cst_28 = arith.constant dense<0.000000e+00> : vector<32x128xf32>
    %57 = tpu.matmul %54, %56, %cst_28 {dimension_numbers = #tpu.dot_dimension_numbers<[1], [0], [0], [1], [0, 0, 1, 1], [], []>} : vector<32x128xf32>, vector<128x128xf32>, vector<32x128xf32> -> vector<32x128xf32>
    %c1_29 = arith.constant 1 : index
    %c0_30 = arith.constant 0 : index
    %c0_31 = arith.constant 0 : index
    %58 = vector.load %arg5[%c1_29, %c0_30, %c0_31] : memref<3x128x128xf32, #tpu.memory_space<vmem>>, vector<1x128x128xf32>
    %59 = vector.shape_cast %58 : vector<1x128x128xf32> to vector<128x128xf32>
    %cst_32 = arith.constant dense<0.000000e+00> : vector<32x128xf32>
    %60 = tpu.matmul %47, %59, %cst_32 {dimension_numbers = #tpu.dot_dimension_numbers<[1], [0], [0], [1], [0, 0, 1, 1], [], []>} : vector<32x128xf32>, vector<128x128xf32>, vector<32x128xf32> -> vector<32x128xf32>
    %61 = arith.addf %57, %60 : vector<32x128xf32>
    %c31_i32_33 = arith.constant 31 : i32
    %62 = tpu.dynamic_rotate %47 by %c31_i32_33 dim 0 : vector<32x128xf32>, i32 -> vector<32x128xf32>
    %cst_34 = arith.constant 0.000000e+00 : f32
    %63 = vector.shape_cast %21 : vector<32x1xi1> to vector<32x1xi1>
    %64 = vector.broadcast %63 : vector<32x1xi1> to vector<32x128xi1>
    %65 = vector.broadcast %cst_34 : f32 to vector<32x128xf32>
    %66 = arith.select %64, %65, %62 : vector<32x128xi1>, vector<32x128xf32>
    %c2_35 = arith.constant 2 : index
    %c0_36 = arith.constant 0 : index
    %c0_37 = arith.constant 0 : index
    %67 = vector.load %arg5[%c2_35, %c0_36, %c0_37] : memref<3x128x128xf32, #tpu.memory_space<vmem>>, vector<1x128x128xf32>
    %68 = vector.shape_cast %67 : vector<1x128x128xf32> to vector<128x128xf32>
    %cst_38 = arith.constant dense<0.000000e+00> : vector<32x128xf32>
    %69 = tpu.matmul %66, %68, %cst_38 {dimension_numbers = #tpu.dot_dimension_numbers<[1], [0], [0], [1], [0, 0, 1, 1], [], []>} : vector<32x128xf32>, vector<128x128xf32>, vector<32x128xf32> -> vector<32x128xf32>
    %70 = arith.addf %61, %69 : vector<32x128xf32>
    %c0_39 = arith.constant 0 : index
    %c0_40 = arith.constant 0 : index
    %71 = vector.load %arg6[%c0_39, %c0_40] : memref<1x128xf32, #tpu.memory_space<vmem>>, vector<1x128xf32>
    %72 = vector.broadcast %71 : vector<1x128xf32> to vector<32x128xf32>
    %73 = arith.addf %70, %72 : vector<32x128xf32>
    %74 = arith.addf %73, %49 : vector<32x128xf32>
    %cst_41 = arith.constant 0.000000e+00 : f32
    %75 = vector.broadcast %cst_41 : f32 to vector<32x128xf32>
    %76 = arith.maximumf %74, %75 : vector<32x128xf32>
    %c0_42 = arith.constant 0 : index
    %c0_43 = arith.constant 0 : index
    %77 = vector.load %arg7[%c0_42, %c0_43] : memref<32x128xf32, #tpu.memory_space<vmem>>, vector<32x128xf32>
    tpu.vector_store %arg7[%c0_42, %c0_43], %76 {strides = array<i32>} : memref<32x128xf32, #tpu.memory_space<vmem>>, vector<32x128xf32>,
    return
  }
  func.func @transform_0(%arg0: i32) -> (i32, i32) {
    %c0_i32 = arith.constant 0 : i32
    %c0_i32_0 = arith.constant 0 : i32
    return %arg0, %c0_i32 : i32, i32
  }
  func.func @transform_1(%arg0: i32) -> (i32, i32) {
    %c0_i32 = arith.constant 0 : i32
    %c0_i32_0 = arith.constant 0 : i32
    %c0_i32_1 = arith.constant 0 : i32
    return %c0_i32, %c0_i32_0 : i32, i32
  }
  func.func @transform_2(%arg0: i32) -> (i32, i32, i32) {
    %c0_i32 = arith.constant 0 : i32
    %c0_i32_0 = arith.constant 0 : i32
    %c0_i32_1 = arith.constant 0 : i32
    %c0_i32_2 = arith.constant 0 : i32
    return %c0_i32, %c0_i32_0, %c0_i32_1 : i32, i32, i32
  }
  func.func @transform_3(%arg0: i32) -> (i32, i32) {
    %c0_i32 = arith.constant 0 : i32
    %c0_i32_0 = arith.constant 0 : i32
    %c0_i32_1 = arith.constant 0 : i32
    return %c0_i32, %c0_i32_0 : i32, i32
  }
  func.func @transform_4(%arg0: i32) -> (i32, i32, i32) {
    %c0_i32 = arith.constant 0 : i32
    %c0_i32_0 = arith.constant 0 : i32
    %c0_i32_1 = arith.constant 0 : i32
    %c0_i32_2 = arith.constant 0 : i32
    return %c0_i32, %c0_i32_0, %c0_i32_1 : i32, i32, i32
  }
  func.func @transform_5(%arg0: i32) -> (i32, i32) {
    %c0_i32 = arith.constant 0 : i32
    %c0_i32_0 = arith.constant 0 : i32
    %c0_i32_1 = arith.constant 0 : i32
    return %c0_i32, %c0_i32_0 : i32, i32
  }
  func.func @transform_6(%arg0: i32) -> (i32, i32) {
    %c0_i32 = arith.constant 0 : i32
    %c0_i32_0 = arith.constant 0 : i32
    return %arg0, %c0_i32 : i32, i32
  }
}

</mosaic_0001>

<bundles_post_ra>
// kernel: residual_block_forward.1
= control target key start
LH: loop header
LB: loop body
LE: loop exit
PB: predicated region body
PF: predicated region fallthrough
CT: control target
= control target key end

     0   :  { %11 = vsyncpa [#allocation3], 0  ;;  %s1514_s21 = smov [#allocation2]   ;;  %s1888_s0 = inlined_call_operand.vmem [shape: f32[32,64], index: 0, kind: input, shape index: {}]   ;;  %s1889_s1 = inlined_call_operand.vmem [shape: f32[64,128], index: 1, kind: input, shape index: {}]   ;;  %s1890_s2 = inlined_call_operand.hbm [shape: f32[3,64,128], index: 2, kind: input, shape index: {}]   ;;  %s1891_s3 = inlined_call_operand.vmem [shape: f32[1,128], index: 3, kind: input, shape index: {}]   ;;  %s1892_s4 = inlined_call_operand.vmem [shape: f32[3,128,128], index: 4, kind: input, shape index: {}]   ;;  %s1893_s5 = inlined_call_operand.vmem [shape: f32[1,128], index: 5, kind: input, shape index: {}]   ;;  %s1894_s6 = inlined_call_operand.vmem [shape: f32[32,128], index: 6, kind: output, shape index: {}]  }
   0x1   :  { %s21_s22 = sshll.u32 %s1514_s21, 4  ;;  %s1490_s25 = scalar_lea.hbm %s1890_s2, 3072  ;;  %s22_s22 = int_to_ptr.vmem [resolvable:$true] %s21_s22 }
   0x2   :  { %p1491_p0 = scmp.ne.s32.totalorder %s1890_s2, %s1490_s25  ;;  %p1494_p1 = scmp.lt.u32.totalorder %s1490_s25, %s1890_s2 }
   0x4   :  { %p1496_p2 = pnand %p1494_p1, %p1491_p0 }
   0x6   :  { %1499 = shalt.err (!%p1496_p2)
}
   0x7   :  { %s1500_s30 = scalar_lea.vmem %s22_s22, 3072  ;;  %p1505_p4 = scmp.lt.s32.totalorder %s22_s22, %s22_s22 }
   0x8   :  { %p1501_p3 = scmp.ne.s32.totalorder %s22_s22, %s1500_s30  ;;  %p1506_p5 = scmp.lt.s32.totalorder %s1500_s30, %s1500_s30 }
   0xa   :  { %p1507_p6 = por %p1506_p5, %p1505_p4 }
   0xc   :  { %p1508_p7 = pnand %p1507_p6, %p1501_p3 }
   0xe   :  { %1511 = shalt.err (!%p1508_p7)
}
   0xf   :  { %s1515_s7 = smov 128   ;;  %s1516_s8 = smov 8  }
  0x10   :  { %27 = dma.hbm_to_vmem [thread:$0]  %s1890_s2, 3072, %s22_s22, [#allocation3], %s1515_s7, %s1515_s7, %s1516_s8  }
  0x11   :  { %1512 = dma.done.wait [#allocation3], 3072  }
  0x12   :  { %1513 = vsyncadd [#allocation3], 4294964224  ;;  %v132_v0 = vld [vmem:[#allocation2 + $0x40] sm:$0xff]  ;;  %v133_v1 = vld [vmem:[#allocation2 + $0x48] sm:$0xff]  ;;  %vm140_vm0 = vcmask 523264   ;;  %v41_v12 = vlaneseq }
  0x13   :  { %v134_v2 = vld [vmem:[#allocation2 + $0x50] sm:$0xff]  ;;  %v1303_v3 = vpack.c.bf16 %v133_v1, %v132_v0  ;;  %v135_v4 = vld [vmem:[#allocation2 + $0x58] sm:$0xff]  ;;  %v136_v6 = vld [vmem:[#allocation2 + $0x60] sm:$0xff] }
  0x14   :  { %v1307_v5 = vpack.c.bf16 %v135_v4, %v134_v2  ;;  %v137_v7 = vld [vmem:[#allocation2 + $0x68] sm:$0xff]  ;;  %v1567_v8 = vld [vmem:[%s1888_s0] sm:$0xff]  ;;  %v138_v10 = vld [vmem:[#allocation2 + $0x70] sm:$0xff]  ;;  %v1579_v18 = vshrl.u32 %v41_v12, 7 }
  0x15   :  { %1304 = vmatprep.subr.bf16.mxu0 %v1303_v3  ;;  %1117 = vmatprep.mubr.msk.f32.mxu0 %vm140_vm0, %v1567_v8  ;;  %v1311_v9 = vpack.c.bf16 %v137_v7, %v136_v6  ;;  %v139_v11 = vld [vmem:[#allocation2 + $0x78] sm:$0xff]  ;;  %v123_v14 = vld [vmem:[#allocation2] sm:$0xff]  ;;  %v482_v16 = vld [vmem:[%s1889_s1 + $0x8] sm:$0xff]  ;;  %v102_v27 = vrot.slane %v1567_v8, 7  ;;  %v335_v7 = vrot.slane %v1567_v8, 1 }
  0x16   :  { %1306 = vmatpush3.bf16.msra.mxu0 %v1303_v3  ;;  %1183 = vmatprep.mubr.msk.f32.mxu1 %vm140_vm0, %v1567_v8  ;;  %v1315_v13 = vpack.c.bf16 %v139_v11, %v138_v10  ;;  %v481_v15 = vld [vmem:[%s1889_s1] sm:$0xff]  ;;  %v124_v17 = vld [vmem:[#allocation2 + $0x8] sm:$0xff]  ;;  %v483_v19 = vld [vmem:[%s1889_s1 + $0x10] sm:$0xff]  ;;  %v50_v31 = vand.u32 15, %v1579_v18  ;;  %vm106_vm1 = vcmp.lt.s32.totalorder %v1579_v18, 1  ;;  %v44_v49 = vadd.s32 16, %v1579_v18 }
  0x17   :  { %1308 = vmatprep.subr.bf16.mxu0 %v1307_v5  ;;  %v484_v20 = vld [vmem:[%s1889_s1 + $0x18] sm:$0xff]  ;;  %v1351_v22 = vpack.c.bf16 %v482_v16, %v481_v15  ;;  %v485_v24 = vld [vmem:[%s1889_s1 + $0x20] sm:$0xff]  ;;  %v486_v25 = vld [vmem:[%s1889_s1 + $0x28] sm:$0xff]  ;;  %v1319_v26 = vpack.c.bf16 %v124_v17, %v123_v14  ;;  %vm339_vm4 = vcmp.lt.s32.totalorder %v1579_v18, 7 }
  0x18   :  { %v1590_v21 = vld [vmem:[%s1888_s0 + $0x18] sm:$0xff]  ;;  %v1355_v23 = vpack.c.bf16 %v484_v20, %v483_v19  ;;  %v125_v28 = vld [vmem:[#allocation2 + $0x10] sm:$0xff]  ;;  %v1359_v32 = vpack.c.bf16 %v486_v25, %v485_v24  ;;  %v1605_v33 = vld [vmem:[%s1888_s0 + $0x8] sm:$0xff]  ;;  %vm1618_vm2 = vcmp.eq.s32.totalorder %v50_v31, 0  ;;  %v64_v57 = vand.u32 15, %v44_v49 }
  0x19   :  { %1352 = vmatprep.subr.bf16.mxu1 %v1351_v22  ;;  %v126_v29 = vld [vmem:[#allocation2 + $0x18] sm:$0xff]  ;;  %v105_v30 = vrot.slane %v1590_v21, 7  ;;  %v487_v34 = vld [vmem:[%s1889_s1 + $0x30] sm:$0xff]  ;;  %v127_v38 = vld [vmem:[#allocation2 + $0x20] sm:$0xff]  ;;  %v103_v59 = vrot.slane %v1605_v33, 7  ;;  %v43_v20 = vadd.s32 8, %v1579_v18 }
  0x1a   :  { %1310 = vmatpush3.bf16.msra.mxu0 %v1307_v5  ;;  %1354 = vmatpush3.bf16.msra.mxu1 %v1351_v22  ;;  %v488_v35 = vld [vmem:[%s1889_s1 + $0x38] sm:$0xff]  ;;  %v1323_v36 = vpack.c.bf16 %v126_v29, %v125_v28  ;;  %v1616_v37 = vld [vmem:[%s1888_s0 + $0x10] sm:$0xff]  ;;  %v128_v39 = vld [vmem:[#allocation2 + $0x28] sm:$0xff]  ;;  %vm1660_vm3 = vcmp.eq.s32.totalorder %v64_v57, 0  ;;  %v45_v25 = vadd.s32 24, %v1579_v18 }
  0x1b   :  { %1312 = vmatprep.subr.bf16.mxu0 %v1311_v9  ;;  %1356 = vmatprep.subr.bf16.mxu1 %v1355_v23  ;;  %v110_v41 = vsel %vm106_vm1, %v105_v30, %v102_v27  ;;  %v1363_v42 = vpack.c.bf16 %v488_v35, %v487_v34  ;;  %v586_v43 = vld [vmem:[%s1892_s4] sm:$0xff]  ;;  %v587_v44 = vld [vmem:[%s1892_s4 + $0x8] sm:$0xff]  ;;  %v1327_v45 = vpack.c.bf16 %v128_v39, %v127_v38  ;;  %v129_v47 = vld [vmem:[#allocation2 + $0x30] sm:$0xff]  ;;  %v104_v54 = vrot.slane %v1616_v37, 7 }
  0x1c   :  { %v119_v46 = vsel %vm1618_vm2, 0.0, %v110_v41  ;;  %v130_v48 = vld [vmem:[#allocation2 + $0x38] sm:$0xff]  ;;  %v1399_v50 = vpack.c.bf16 %v587_v44, %v586_v43  ;;  %v588_v51 = vld [vmem:[%s1892_s4 + $0x10] sm:$0xff]  ;;  %v357_v55 = vld [vmem:[#allocation2 + $0x80] sm:$0xff]  ;;  %v109_v4 = vsel %vm106_vm1, %v102_v27, %v103_v59  ;;  %v57_v28 = vand.u32 15, %v43_v20 }
  0x1d   :  { %v589_v52 = vld [vmem:[%s1892_s4 + $0x18] sm:$0xff]  ;;  %v1331_v53 = vpack.c.bf16 %v130_v48, %v129_v47  ;;  %v358_v56 = vld [vmem:[#allocation2 + $0x88] sm:$0xff]  ;;  %v590_v60 = vld [vmem:[%s1892_s4 + $0x20] sm:$0xff]  ;;  %v108_v2 = vsel %vm106_vm1, %v103_v59, %v104_v54  ;;  %v107_v8 = vsel %vm106_vm1, %v104_v54, %v105_v30  ;;  %v71_v31 = vand.u32 15, %v45_v25 }
  0x1e   :  { %1314 = vmatpush3.bf16.msra.mxu0 %v1311_v9  ;;  %1358 = vmatpush3.bf16.msra.mxu1 %v1355_v23  ;;  %v1403_v58 = vpack.c.bf16 %v589_v52, %v588_v51  ;;  %v591_v61 = vld [vmem:[%s1892_s4 + $0x28] sm:$0xff]  ;;  %v1335_v62 = vpack.c.bf16 %v358_v56, %v357_v55  ;;  %v359_v63 = vld [vmem:[#allocation2 + $0x90] sm:$0xff]  ;;  %v360_v0 = vld [vmem:[#allocation2 + $0x98] sm:$0xff]  ;;  %v336_v9 = vrot.slane %v1605_v33, 1  ;;  %v121_v11 = vsel %vm1660_vm3, 0.0, %v108_v2 }
  0x1f   :  { %1316 = vmatprep.subr.bf16.mxu0 %v1315_v13  ;;  %1360 = vmatprep.subr.bf16.mxu1 %v1359_v32  ;;  %v1407_v3 = vpack.c.bf16 %v591_v61, %v590_v60  ;;  %v592_v5 = vld [vmem:[%s1892_s4 + $0x30] sm:$0xff]  ;;  %v593_v6 = vld [vmem:[%s1892_s4 + $0x38] sm:$0xff]  ;;  %v1339_v10 = vpack.c.bf16 %v360_v0, %v359_v63  ;;  %v361_v12 = vld [vmem:[#allocation2 + $0xa0] sm:$0xff]  ;;  %vm1711_vm5 = vcmp.eq.s32.totalorder %v57_v28, 15  ;;  %vm1727_vm6 = vcmp.eq.s32.totalorder %v71_v31, 15 }
  0x20   :  { %v1411_v14 = vpack.c.bf16 %v593_v6, %v592_v5  ;;  %v594_v15 = vld [vmem:[%s1892_s4 + $0x40] sm:$0xff]  ;;  %v595_v16 = vld [vmem:[%s1892_s4 + $0x48] sm:$0xff]  ;;  %v342_v19 = vsel %vm339_vm4, %v335_v7, %v336_v9  ;;  %v363_v22 = vld [vmem:[#allocation2 + $0xb0] sm:$0xff] }
  0x21   :  { %v364_v23 = vld [vmem:[#allocation2 + $0xb8] sm:$0xff]  ;;  %v1415_v24 = vpack.c.bf16 %v595_v16, %v594_v15  ;;  %v952_v29 = vld [vmem:[%s1892_s4 + $0x80] sm:$0xff]  ;;  %v953_v30 = vld [vmem:[%s1892_s4 + $0x88] sm:$0xff] }
  0x22   :  { %1318 = vmatpush3.bf16.msra.mxu0 %v1315_v13  ;;  %1362 = vmatpush3.bf16.msra.mxu1 %v1359_v32  ;;  %v362_v13 = vld [vmem:[#allocation2 + $0xa8] sm:$0xff]  ;;  %v1347_v27 = vpack.c.bf16 %v364_v23, %v363_v22  ;;  %v338_v32 = vrot.slane %v1590_v21, 1  ;;  %v1367_v35 = vpack.c.bf16 %v953_v30, %v952_v29  ;;  %v956_v43 = vld [vmem:[%s1892_s4 + $0xa0] sm:$0xff]  ;;  %v958_v47 = vld [vmem:[%s1892_s4 + $0xb0] sm:$0xff] }
  0x23   :  { %1320 = vmatprep.subr.bf16.mxu0 %v1319_v26  ;;  %1364 = vmatprep.subr.bf16.mxu1 %v1363_v42  ;;  %v1343_v17 = vpack.c.bf16 %v362_v13, %v361_v12  ;;  %v957_v44 = vld [vmem:[%s1892_s4 + $0xa8] sm:$0xff]  ;;  %v959_v48 = vld [vmem:[%s1892_s4 + $0xb8] sm:$0xff]  ;;  %v964_v56 = vld [vmem:[%s1892_s4 + $0xe0] sm:$0xff] }
  0x24   :  { %v343_v41 = vsel %vm339_vm4, %v338_v32, %v335_v7  ;;  %v1379_v49 = vpack.c.bf16 %v959_v48, %v958_v47  ;;  %v961_v51 = vld [vmem:[%s1892_s4 + $0xc8] sm:$0xff]  ;;  %v963_v54 = vld [vmem:[%s1892_s4 + $0xd8] sm:$0xff]  ;;  %v596_v59 = vld [vmem:[%s1892_s4 + $0x50] sm:$0xff] }
  0x25   :  { %1118 = vmatmul.mubr.msk.f32.vlgmr.msra.gmra.mrb[0].mxu0 %vm140_vm0, %v1605_v33  ;;  %v965_v57 = vld [vmem:[%s1892_s4 + $0xe8] sm:$0xff]  ;;  %v597_v60 = vld [vmem:[%s1892_s4 + $0x58] sm:$0xff]  ;;  %v598_v2 = vld [vmem:[%s1892_s4 + $0x60] sm:$0xff] }
  0x26   :  { %1322 = vmatpush3.bf16.msra.mxu0 %v1319_v26  ;;  %1120 = vmatprep.mubr.msk.f32.mxu0 %vm140_vm0, %v1616_v37  ;;  %v337_v26 = vrot.slane %v1616_v37, 1  ;;  %v1419_v61 = vpack.c.bf16 %v597_v60, %v596_v59  ;;  %v967_v63 = vld [vmem:[%s1892_s4 + $0xf8] sm:$0xff]  ;;  %v600_v5 = vld [vmem:[%s1892_s4 + $0x70] sm:$0xff]  ;;  %vm968_vm7 = vmneg %vm1618_vm2 }
  0x27   :  { %1324 = vmatprep.subr.bf16.mxu0 %v1323_v36  ;;  %1366 = vmatpush3.bf16.msra.mxu1 %v1363_v42  ;;  %v601_v6 = vld [vmem:[%s1892_s4 + $0x78] sm:$0xff]  ;;  %vm970_vm8 = vmneg %vm1660_vm3  ;;  %v977_v1 = vld [vmem:[%s1892_s4 + $0x128] sm:$0xff] }
  0x28   :  { %1400 = vmatprep.subr.bf16.mxu1 %v1399_v50  ;;  %v341_v34 = vsel %vm339_vm4, %v336_v9, %v337_v26  ;;  %v340_v38 = vsel %vm339_vm4, %v337_v26, %v338_v32  ;;  %v1427_v7 = vpack.c.bf16 %v601_v6, %v600_v5  ;;  %v972_v9 = vld [vmem:[%s1892_s4 + $0x100] sm:$0xff]  ;;  %v985_v59 = vld [vmem:[%s1892_s4 + $0x168] sm:$0xff]  ;;  %vm988_vm9 = vmneg %vm1711_vm5 }
  0x29   :  { %1121 = vmatmul.mubr.msk.f32.gmra.mrb[2].mxu0 %vm140_vm0, %v1590_v21  ;;  %v980_v18 = vld [vmem:[%s1892_s4 + $0x140] sm:$0xff]  ;;  %vm990_vm10 = vmneg %vm1727_vm6 }
  0x2a   :  { %1326 = vmatpush3.bf16.msra.mxu0 %v1323_v36  ;;  %1139 = vmatprep.mubr.msk.f32.mxu0 %vm140_vm0, %v119_v46  ;;  %v954_v36 = vld [vmem:[%s1892_s4 + $0x90] sm:$0xff]  ;;  %v1375_v46 = vpack.c.bf16 %v957_v44, %v956_v43 }
  0x2b   :  { %1328 = vmatprep.subr.bf16.mxu0 %v1327_v45  ;;  %1184 = vmatmul.mubr.msk.f32.vlgmr.msra.gmra.mrb[0].mxu1 %vm140_vm0, %v1605_v33 }
  0x2c   :  { %1402 = vmatpush3.bf16.msra.mxu1 %v1399_v50  ;;  %1186 = vmatprep.mubr.msk.f32.mxu1 %vm140_vm0, %v1616_v37  ;;  %v955_v37 = vld [vmem:[%s1892_s4 + $0x98] sm:$0xff]  ;;  %v960_v50 = vld [vmem:[%s1892_s4 + $0xc0] sm:$0xff] }
  0x2d   :  { %1404 = vmatprep.subr.bf16.mxu1 %v1403_v58  ;;  %v1371_v42 = vpack.c.bf16 %v955_v37, %v954_v36  ;;  %v1383_v52 = vpack.c.bf16 %v961_v51, %v960_v50  ;;  %v978_v50 = vld [vmem:[%s1892_s4 + $0x130] sm:$0xff]  ;;  %v979_v51 = vld [vmem:[%s1892_s4 + $0x138] sm:$0xff] }
  0x2e   :  { %1330 = vmatpush3.bf16.msra.mxu0 %v1327_v45  ;;  %v355_v45 = vsel %vm1727_vm6, 0.0, %v343_v41 }
  0x2f   :  { %1332 = vmatprep.subr.bf16.mxu0 %v1331_v53  ;;  %1187 = vmatmul.mubr.msk.f32.gmra.mrb[2].mxu1 %vm140_vm0, %v1590_v21  ;;  %v353_v21 = vsel %vm1711_vm5, 0.0, %v341_v34  ;;  %v974_v34 = vld [vmem:[%s1892_s4 + $0x110] sm:$0xff] }
  0x30   :  { %1406 = vmatpush3.bf16.msra.mxu1 %v1403_v58  ;;  %v1391_v58 = vpack.c.bf16 %v965_v57, %v964_v56  ;;  %v983_v56 = vld [vmem:[%s1892_s4 + $0x158] sm:$0xff] }
  0x31   :  { %1408 = vmatprep.subr.bf16.mxu1 %v1407_v3 }
  0x32   :  { %1334 = vmatpush3.bf16.msra.mxu0 %v1331_v53  ;;  %v962_v53 = vld [vmem:[%s1892_s4 + $0xd0] sm:$0xff] }
  0x33   :  { %1336 = vmatprep.subr.bf16.mxu0 %v1335_v62  ;;  %v1387_v55 = vpack.c.bf16 %v963_v54, %v962_v53  ;;  %v981_v53 = vld [vmem:[%s1892_s4 + $0x148] sm:$0xff] }
  0x34   :  { %1410 = vmatpush3.bf16.msra.mxu1 %v1407_v3  ;;  %v599_v3 = vld [vmem:[%s1892_s4 + $0x68] sm:$0xff]  ;;  %v1447_v54 = vpack.c.bf16 %v981_v53, %v980_v18 }
  0x35   :  { %1140 = vmatmul.mubr.msk.f32.vlgmr.msra.gmra.mrb[0].mxu0 %vm140_vm0, %v109_v4  ;;  %1412 = vmatprep.subr.bf16.mxu1 %v1411_v14  ;;  %v1423_v4 = vpack.c.bf16 %v599_v3, %v598_v2 }
  0x36   :  { %1338 = vmatpush3.bf16.msra.mxu0 %v1335_v62  ;;  %1142 = vmatprep.mubr.msk.f32.mxu0 %vm140_vm0, %v121_v11  ;;  %v966_v62 = vld [vmem:[%s1892_s4 + $0xf0] sm:$0xff] }
  0x37   :  { %1340 = vmatprep.subr.bf16.mxu0 %v1339_v10  ;;  %v1395_v0 = vpack.c.bf16 %v967_v63, %v966_v62  ;;  %v987_v62 = vld [vmem:[%s1892_s4 + $0x178] sm:$0xff] }
  0x38   :  { %1414 = vmatpush3.bf16.msra.mxu1 %v1411_v14  ;;  %v947_v14 = vld [vmem:[%s1891_s3] ss:$0 sm:$0xff] }
  0x39   :  { %1143 = vmatmul.mubr.msk.f32.gmra.mrb[2].mxu0 %vm140_vm0, %v107_v8  ;;  %1416 = vmatprep.subr.bf16.mxu1 %v1415_v24 }
  0x3a   :  { %1342 = vmatpush3.bf16.msra.mxu0 %v1339_v10  ;;  %1161 = vmatprep.mubr.msk.f32.mxu0 %vm140_vm0, %v342_v19  ;;  %v973_v10 = vld [vmem:[%s1892_s4 + $0x108] sm:$0xff] }
  0x3b   :  { %1344 = vmatprep.subr.bf16.mxu0 %v1343_v17  ;;  %v1431_v11 = vpack.c.bf16 %v973_v10, %v972_v9 }
  0x3c   :  { %1418 = vmatpush3.bf16.msra.mxu1 %v1415_v24 }
  0x3d   :  { %1420 = vmatprep.subr.bf16.mxu1 %v1419_v61 }
  0x3e   :  { %1346 = vmatpush3.bf16.msra.mxu0 %v1343_v17 }
  0x3f   :  { %1348 = vmatprep.subr.bf16.mxu0 %v1347_v27 }
  0x40   :  { %1422 = vmatpush3.bf16.msra.mxu1 %v1419_v61  ;;  %v986_v61 = vld [vmem:[%s1892_s4 + $0x170] sm:$0xff] }
  0x41   :  { %1424 = vmatprep.subr.bf16.mxu1 %v1423_v4  ;;  %v1459_v63 = vpack.c.bf16 %v987_v62, %v986_v61 }
  0x42   :  { %1350 = vmatpush3.bf16.msra.mxu0 %v1347_v27 }
  0x43   :  { %1368 = vmatprep.subr.bf16.mxu0 %v1367_v35 }
  0x44   :  { %1426 = vmatpush3.bf16.msra.mxu1 %v1423_v4 }
  0x45   :  { %1162 = vmatmul.mubr.msk.f32.vlgmr.msra.gmra.mrb[0].mxu0 %vm140_vm0, %v353_v21  ;;  %1428 = vmatprep.subr.bf16.mxu1 %v1427_v7 }
  0x46   :  { %1164 = vmatprep.mubr.msk.f32.mxu0 %vm140_vm0, %v340_v38  ;;  %1370 = vmatpush3.bf16.msra.mxu0 %v1367_v35  ;;  %v975_v35 = vld [vmem:[%s1892_s4 + $0x118] sm:$0xff] }
  0x47   :  { %1372 = vmatprep.subr.bf16.mxu0 %v1371_v42  ;;  %v1435_v43 = vpack.c.bf16 %v975_v35, %v974_v34 }
  0x48   :  { %1430 = vmatpush3.bf16.msra.mxu1 %v1427_v7 }
  0x49   :  { %1165 = vmatmul.mubr.msk.f32.gmra.mrb[2].mxu0 %vm140_vm0, %v355_v45  ;;  %1432 = vmatprep.subr.bf16.mxu1 %v1431_v11 }
  0x4a   :  { %1374 = vmatpush3.bf16.msra.mxu0 %v1371_v42 }
  0x4b   :  { %1376 = vmatprep.subr.bf16.mxu0 %v1375_v46 }
  0x4e   :  { %1378 = vmatpush3.bf16.msra.mxu0 %v1375_v46  ;;  %v976_v46 = vld [vmem:[%s1892_s4 + $0x120] sm:$0xff] }
  0x4f   :  { %1380 = vmatprep.subr.bf16.mxu0 %v1379_v49 }
  0x52   :  { %1382 = vmatpush3.bf16.msra.mxu0 %v1379_v49  ;;  %v1439_v49 = vpack.c.bf16 %v977_v1, %v976_v46 }
  0x53   :  { %1384 = vmatprep.subr.bf16.mxu0 %v1383_v52 }
  0x56   :  { %1386 = vmatpush3.bf16.msra.mxu0 %v1383_v52  ;;  %v1443_v52 = vpack.c.bf16 %v979_v51, %v978_v50 }
  0x57   :  { %1388 = vmatprep.subr.bf16.mxu0 %v1387_v55 }
  0x5a   :  { %1390 = vmatpush3.bf16.msra.mxu0 %v1387_v55  ;;  %v982_v55 = vld [vmem:[%s1892_s4 + $0x150] sm:$0xff] }
  0x5b   :  { %1392 = vmatprep.subr.bf16.mxu0 %v1391_v58  ;;  %v1451_v57 = vpack.c.bf16 %v983_v56, %v982_v55 }
  0x5e   :  { %1394 = vmatpush3.bf16.msra.mxu0 %v1391_v58  ;;  %v984_v58 = vld [vmem:[%s1892_s4 + $0x160] sm:$0xff] }
  0x5f   :  { %1396 = vmatprep.subr.bf16.mxu0 %v1395_v0  ;;  %v1455_v60 = vpack.c.bf16 %v985_v59, %v984_v58 }
  0x62   :  { %1398 = vmatpush3.bf16.msra.mxu0 %v1395_v0 }
  0xfe   :  { %v1798_v12 = vpop.f32.mrb[0].mxu1 }
  0xff   :  { %v1800_v13 = vpop.f32.mrb[1].mxu1 }
 0x102   :  { %v1188_v0 = vpop.f32.mrb[2].mxu1 }
 0x103   :  { %v565_v2 = vpop.f32.mrb[3].mxu1 }
 0x118   :  { %v1163_v8 = vpop.f32.mrb[0].mxu0 }
 0x119   :  { %v474_v15 = vadd.f32 %v1163_v8, %v947_v14  ;;  %v443_v16 = vpop.f32.mrb[1].mxu0 }
 0x11a   :  { %v473_v17 = vadd.f32 %v947_v14, %v443_v16 }
 0x11b   :  { %v478_v19 = vmax.f32 %v474_v15, 0.0 }
 0x11c   :  { %v477_v20 = vmax.f32 %v473_v17, 0.0  ;;  %v1166_v22 = vpop.f32.mrb[2].mxu0 }
 0x11d   :  { %v575_v23 = vrot.slane %v478_v19, 7  ;;  %v790_v24 = vrot.slane %v478_v19, 1  ;;  %v476_v25 = vadd.f32 %v1166_v22, %v947_v14  ;;  %v453_v26 = vpop.f32.mrb[3].mxu0 }
 0x11e   :  { %v574_v27 = vrot.slane %v477_v20, 7  ;;  %v789_v28 = vrot.slane %v477_v20, 1  ;;  %v475_v29 = vadd.f32 %v947_v14, %v453_v26  ;;  %1221 = vmatprep.mubr.f32.mxu0 %v477_v20  ;;  %v992_v14 = vld [vmem:[%s1893_s5] ss:$0 sm:$0xff] }
 0x11f   :  { %v480_v30 = vmax.f32 %v476_v25, 0.0  ;;  %1222 = vmatmul.mubr.f32.vlgmr.msra.gmra.mrb[4].mxu0 %v478_v19 }
 0x120   :  { %v479_v31 = vmax.f32 %v475_v29, 0.0  ;;  %v580_v32 = vsel %vm106_vm1, %v574_v27, %v575_v23  ;;  %v795_v36 = vsel %vm339_vm4, %v789_v28, %v790_v24 }
 0x121   :  { %v577_v37 = vrot.slane %v480_v30, 7  ;;  %v792_v21 = vrot.slane %v480_v30, 1 }
 0x122   :  { %v576_v38 = vrot.slane %v479_v31, 7  ;;  %v791_v41 = vrot.slane %v479_v31, 1  ;;  %1224 = vmatprep.mubr.f32.mxu0 %v479_v31 }
 0x123   :  { %1225 = vmatmul.mubr.f32.gmra.mrb[6].mxu0 %v480_v30  ;;  %v581_v42 = vsel %vm106_vm1, %v577_v37, %v574_v27  ;;  %v796_v44 = vsel %vm339_vm4, %v792_v21, %v789_v28 }
 0x124   :  { %1259 = vmatprep.mubr.msk.f32.mxu1 %vm968_vm7, %v581_v42  ;;  %v579_v45 = vsel %vm106_vm1, %v575_v23, %v576_v38  ;;  %v578_v40 = vsel %vm106_vm1, %v576_v38, %v577_v37  ;;  %v794_v47 = vsel %vm339_vm4, %v790_v24, %v791_v41  ;;  %v793_v48 = vsel %vm339_vm4, %v791_v41, %v792_v21 }
 0x125   :  { %1260 = vmatmul.mubr.f32.vlgmr.msra.gmra.mrb[4].mxu1 %v580_v32 }
 0x126   :  { %1434 = vmatpush3.bf16.msra.mxu1 %v1431_v11  ;;  %1262 = vmatprep.mubr.msk.f32.mxu1 %vm970_vm8, %v579_v45 }
 0x127   :  { %1436 = vmatprep.subr.bf16.mxu1 %v1435_v43 }
 0x129   :  { %1263 = vmatmul.mubr.f32.gmra.mrb[6].mxu1 %v578_v40 }
 0x12a   :  { %1438 = vmatpush3.bf16.msra.mxu1 %v1435_v43  ;;  %1297 = vmatprep.mubr.f32.mxu1 %v795_v36 }
 0x12b   :  { %1440 = vmatprep.subr.bf16.mxu1 %v1439_v49 }
 0x12e   :  { %1442 = vmatpush3.bf16.msra.mxu1 %v1439_v49 }
 0x12f   :  { %1444 = vmatprep.subr.bf16.mxu1 %v1443_v52 }
 0x132   :  { %1446 = vmatpush3.bf16.msra.mxu1 %v1443_v52 }
 0x133   :  { %1448 = vmatprep.subr.bf16.mxu1 %v1447_v54 }
 0x136   :  { %1450 = vmatpush3.bf16.msra.mxu1 %v1447_v54 }
 0x137   :  { %1452 = vmatprep.subr.bf16.mxu1 %v1451_v57 }
 0x13a   :  { %1454 = vmatpush3.bf16.msra.mxu1 %v1451_v57 }
 0x13b   :  { %1456 = vmatprep.subr.bf16.mxu1 %v1455_v60 }
 0x13e   :  { %1458 = vmatpush3.bf16.msra.mxu1 %v1455_v60 }
 0x13f   :  { %1460 = vmatprep.subr.bf16.mxu1 %v1459_v63 }
 0x142   :  { %1462 = vmatpush3.bf16.msra.mxu1 %v1459_v63 }
 0x145   :  { %1298 = vmatmul.mubr.msk.f32.vlgmr.msra.gmra.mrb[4].mxu1 %vm988_vm9, %v794_v47 }
 0x146   :  { %1300 = vmatprep.mubr.f32.mxu1 %v793_v48 }
 0x149   :  { %1301 = vmatmul.mubr.msk.f32.gmra.mrb[6].mxu1 %vm990_vm10, %v796_v44 }
 0x1f2   :  { %v1223_v3 = vpop.f32.mrb[4].mxu0 }
 0x1f3   :  { %v1463_v4 = vadd.f32 %v1223_v3, %v1798_v12  ;;  %v685_v5 = vpop.f32.mrb[5].mxu0 }
 0x1f4   :  { %v1466_v6 = vadd.f32 %v685_v5, %v1800_v13 }
 0x1f6   :  { %v1226_v7 = vpop.f32.mrb[6].mxu0 }
 0x1f7   :  { %v1469_v9 = vadd.f32 %v1226_v7, %v1188_v0  ;;  %v695_v10 = vpop.f32.mrb[7].mxu0 }
 0x1f8   :  { %v1472_v11 = vadd.f32 %v695_v10, %v565_v2 }
 0x218   :  { %v1299_v33 = vpop.f32.mrb[4].mxu1 }
 0x219   :  { %v1464_v39 = vadd.f32 %v1463_v4, %v1299_v33  ;;  %v884_v8 = vpop.f32.mrb[5].mxu1 }
 0x21a   :  { %v1467_v15 = vadd.f32 %v1466_v6, %v884_v8 }
 0x21b   :  { %v1465_v16 = vadd.f32 %v1464_v39, %v992_v14 }
 0x21c   :  { %v1468_v17 = vadd.f32 %v1467_v15, %v992_v14  ;;  %v1302_v19 = vpop.f32.mrb[6].mxu1 }
 0x21d   :  { %v923_v20 = vmax.f32 %v1465_v16, 0.0  ;;  %v1470_v12 = vadd.f32 %v1469_v9, %v1302_v19  ;;  %v894_v22 = vpop.f32.mrb[7].mxu1 }
 0x21e   :  { %v922_v23 = vmax.f32 %v1468_v17, 0.0  ;;  %v1473_v13 = vadd.f32 %v1472_v11, %v894_v22 }
 0x21f   :  { %927 = vst [vmem:[%s1894_s6 + $0x8] sm:$0xff] %v923_v20  ;;  %v1471_v24 = vadd.f32 %v1470_v12, %v992_v14 }
 0x220   :  { %926 = vst [vmem:[%s1894_s6] sm:$0xff] %v922_v23  ;;  %v1474_v25 = vadd.f32 %v1473_v13, %v992_v14 }
 0x221   :  { %v925_v26 = vmax.f32 %v1471_v24, 0.0 }
 0x222   :  { %v924_v27 = vmax.f32 %v1474_v25, 0.0 }
 0x223   :  { %929 = vst [vmem:[%s1894_s6 + $0x18] sm:$0xff] %v925_v26 }
 0x224   :  { %928 = vst [vmem:[%s1894_s6 + $0x10] sm:$0xff] %v924_v27 }
 0x225   :  { %934 = vsyncpa [#allocation3], 1 }

</bundles_post_ra>
